<compile_context>
chip_gen: v7x
topology: tpu7x:2x2x1
jax: 0.10.0
libtpu: 0.0.40
codegen_flags: <defaults>
</compile_context>

<pallas_src>
import jax
import jax.numpy as jnp
from jax import lax
from jax.experimental import pallas as pl
from jax.experimental.pallas import tpu as pltpu


LANE = 128            # TPU lane width (last dim)
SUBLANE = 8           # TPU sublane width (second-to-last dim)
MAX_BATCH_TILE = 512
NEG_INF = -1e30       # finite "-inf" for padded logit columns (exp() -> 0)


def _round_up(n, m):
    return pl.cdiv(n, m) * m


def _vmem_capacity_bytes():
    """Physical VMEM per TensorCore, with a conservative fallback."""
    try:
        info = pltpu.get_tpu_info()
        cap = getattr(info, "vmem_capacity_bytes", None)
        if cap:
            return int(cap)
    except Exception:
        pass
    return 64 * 1024 * 1024  # v7x per-TC size (the smallest current generation)


# ----------------------------------------------------------------------------
# Kernels
# ----------------------------------------------------------------------------
def _fused_kernel(x_ref, rw_ref, rb_ref, ew_ref, eb_ref, out_ref):
    """Resident-weight path. Grid: (num_batch_tiles,) ["parallel"].

    x_ref:  (TB, Dp)          rw_ref: (depth, Dp, Dp)   rb_ref: (depth, 1, Dp)
    ew_ref: (Dp, Op)          eb_ref: (1, Op)           out_ref:(TB, Op)
    """
    depth = rw_ref.shape[0]
    mm_dtype = rw_ref.dtype  # bf16 (default) or f32

    def gate(d, h):
        z = jnp.dot(h, rw_ref[d], preferred_element_type=jnp.float32) + rb_ref[d]
        return jnp.tanh(z).astype(mm_dtype)

    h = lax.fori_loop(0, depth, gate, x_ref[...].astype(mm_dtype), unroll=True)

    logits = (jnp.dot(h, ew_ref[...], preferred_element_type=jnp.float32)
              + eb_ref[...])
    m = jnp.max(logits, axis=-1, keepdims=True)
    e = jnp.exp(logits - m)
    denom = jnp.sum(e, axis=-1, keepdims=True)
    # Reciprocal goes to the (otherwise idle) EUP slot.
    out_ref[...] = e * pl.reciprocal(denom, approx=False)


def _streamed_kernel(x_ref, rw_ref, rb_ref, ew_ref, eb_ref, out_ref, h_ref):
    """Fallback when the gate-weight stack does not fit VMEM.
    Grid: (num_batch_tiles ["parallel"], quantum_depth ["arbitrary"]).
    One gate weight streamed per grid step; h carried in a VMEM scratch."""
    d = pl.program_id(1)
    last = pl.num_programs(1) - 1
    mm_dtype = rw_ref.dtype

    @pl.when(d == 0)
    def _():
        h_ref[...] = x_ref[...]

    h = jnp.tanh(
        jnp.dot(h_ref[...].astype(mm_dtype), rw_ref[0],
                preferred_element_type=jnp.float32)
        + rb_ref[0]
    )
    h_ref[...] = h

    @pl.when(d == last)
    def _():
        logits = (jnp.dot(h.astype(mm_dtype), ew_ref[...],
                          preferred_element_type=jnp.float32)
                  + eb_ref[...])
        m = jnp.max(logits, axis=-1, keepdims=True)
        e = jnp.exp(logits - m)
        denom = jnp.sum(e, axis=-1, keepdims=True)
        out_ref[...] = e * pl.reciprocal(denom, approx=False)


# ----------------------------------------------------------------------------
# Parameter prep (one-time): transpose, pad, fold cos(phase), optional bf16 cast
# ----------------------------------------------------------------------------
def prepare_params(rot_w, rot_b, ent_w, ent_b, phase_shift, *, use_bf16=True):
    """rot_w: (depth, D, D)  rot_b: (depth, D)  ent_w: (O, D)  ent_b: (O,)
    phase_shift: (O,).  Weights go to (in, out) layout, feature dims padded to a
    multiple of 128 lanes, and the per-gate cos(phase) multiply is folded into the
    input rows of the *next* matmul's weight ((h*c) @ W == h @ (diag(c) W))."""
    depth, D, D2 = rot_w.shape
    assert D == D2
    assert depth >= 1
    O = ent_w.shape[0]
    assert ent_w.shape == (O, D)
    assert D == O, "phase_shift broadcast requires input_dim == output_dim"

    Dp = _round_up(D, LANE)
    Op = _round_up(O, LANE)
    f32 = jnp.float32
    wdtype = jnp.bfloat16 if use_bf16 else f32

    cosp = jnp.cos(phase_shift.astype(f32))                        # (D,)

    rw_t = jnp.transpose(rot_w.astype(f32), (0, 2, 1))             # (depth, in, out)
    if depth > 1:
        scale = jnp.concatenate(
            [jnp.ones((1, D), f32),
             jnp.broadcast_to(cosp[None, :], (depth - 1, D))], axis=0)
        rw_t = rw_t * scale[:, :, None]                            # scale input rows
    ew_t = ent_w.T.astype(f32) * cosp[:, None]                     # (in, out), folded

    rw = jnp.zeros((depth, Dp, Dp), wdtype).at[:, :D, :D].set(rw_t.astype(wdtype))
    rb = jnp.zeros((depth, 1, Dp), f32).at[:, 0, :D].set(rot_b.astype(f32))
    ew = jnp.zeros((Dp, Op), wdtype).at[:D, :O].set(ew_t.astype(wdtype))
    # Padded logit columns get a very negative bias so the softmax ignores them.
    eb = jnp.full((1, Op), NEG_INF, f32).at[0, :O].set(ent_b.astype(f32))

    return dict(rw=rw, rb=rb, ew=ew, eb=eb, in_dim=D, out_dim=O)


# ----------------------------------------------------------------------------
# Forward
# ----------------------------------------------------------------------------
def quantum_inspired_forward(x, params):
    """x: (B, D) -> softmax probabilities (B, O)."""
    rw, rb, ew, eb = params["rw"], params["rb"], params["ew"], params["eb"]
    D, O = params["in_dim"], params["out_dim"]
    depth, Dp, _ = rw.shape
    Op = ew.shape[1]
    wbytes = rw.dtype.itemsize

    B = x.shape[0]
    assert x.shape == (B, D)

    # --- batch tile: <=512 rows, multiple of 256 when big (MXU fill on v6e/v7x),
    #     capped near half the batch so nb>=2 feeds both v7x TensorCores.
    half = _round_up(max((B + 1) // 2, 1), SUBLANE)
    TB = min(MAX_BATCH_TILE, half)
    if TB >= 256:
        TB = (TB // 256) * 256

    # --- VMEM budget: physical capacity minus 25% headroom for compiler scratch.
    vmem_budget = int(0.75 * _vmem_capacity_bytes())

    def act_bytes(tb):  # double-buffered x/out blocks + (fallback-only) h scratch
        return 4 * (2 * tb * Dp + 2 * tb * Op + tb * Dp)

    w_resident = 2 * (depth * Dp * Dp * wbytes + depth * Dp * 4
                      + Dp * Op * wbytes + Op * 4)
    w_streamed = 2 * (Dp * Dp * wbytes + Dp * 4 + Dp * Op * wbytes + Op * 4)

    resident = (w_resident + act_bytes(TB)) <= vmem_budget
    w_bytes = w_resident if resident else w_streamed
    while TB > SUBLANE and w_bytes + act_bytes(TB) > vmem_budget:
        TB = max(SUBLANE, _round_up(TB // 2, SUBLANE))

    Bp = _round_up(B, TB)
    nb = Bp // TB

    # --- pad fast path: skip the extra HBM pass when no padding is required.
    needs_pad = (Dp != D) or (Bp != B) or (x.dtype != jnp.float32)
    if needs_pad:
        xp = jnp.zeros((Bp, Dp), jnp.float32).at[:B, :D].set(x.astype(jnp.float32))
    else:
        xp = x

    # --- advisory cost estimate matching the actual fetch pattern.
    w_fetch = 1 if resident else nb
    cost = pl.CostEstimate(
        flops=2 * Bp * Dp * Dp * depth + 2 * Bp * Dp * Op,
        transcendentals=Bp * Dp * depth + Bp * Op + Bp,
        bytes_accessed=(4 * Bp * Dp + 4 * Bp * Op
                        + w_fetch * depth * (Dp * Dp * wbytes + Dp * 4)
                        + Dp * Op * wbytes + Op * 4),
    )

    vmem_limit = int(min(max(2 * (w_bytes + act_bytes(TB)), 16 * 1024 * 1024),
                         vmem_budget))

    if resident:
        grid_spec = pltpu.PrefetchScalarGridSpec(
            num_scalar_prefetch=0,
            grid=(nb,),
            in_specs=[
                pl.BlockSpec((TB, Dp), lambda i: (i, 0)),          # x per batch tile
                pl.BlockSpec((depth, Dp, Dp), lambda i: (0, 0, 0)),  # resident gate W
                pl.BlockSpec((depth, 1, Dp), lambda i: (0, 0, 0)),   # resident gate b
                pl.BlockSpec((Dp, Op), lambda i: (0, 0)),           # entanglement W
                pl.BlockSpec((1, Op), lambda i: (0, 0)),            # entanglement b
            ],
            out_specs=pl.BlockSpec((TB, Op), lambda i: (i, 0)),
        )
        kernel = _fused_kernel
        dims = ("parallel",)
    else:
        grid_spec = pltpu.PrefetchScalarGridSpec(
            num_scalar_prefetch=0,
            grid=(nb, depth),
            in_specs=[
                pl.BlockSpec((TB, Dp), lambda i, d: (i, 0)),
                pl.BlockSpec((1, Dp, Dp), lambda i, d: (d, 0, 0)),  # stream one gate/step
                pl.BlockSpec((1, 1, Dp), lambda i, d: (d, 0, 0)),
                pl.BlockSpec((Dp, Op), lambda i, d: (0, 0)),
                pl.BlockSpec((1, Op), lambda i, d: (0, 0)),
            ],
            out_specs=pl.BlockSpec((TB, Op), lambda i, d: (i, 0)),
            scratch_shapes=[pltpu.VMEM((TB, Dp), jnp.float32)],
        )
        kernel = _streamed_kernel
        dims = ("parallel", "arbitrary")

    out_p = pl.pallas_call(
        kernel,
        out_shape=jax.ShapeDtypeStruct((Bp, Op), jnp.float32),
        grid_spec=grid_spec,
        compiler_params=pltpu.CompilerParams(
            dimension_semantics=dims,
            vmem_limit_bytes=vmem_limit,
        ),
        cost_estimate=cost,
    )(xp, rw, rb, ew, eb)

    if Bp == B and Op == O:
        return out_p
    return out_p[:B, :O]


# ----------------------------------------------------------------------------
# Pure-JAX reference mirroring the PyTorch forward exactly.
# ----------------------------------------------------------------------------
def reference_forward(x, rot_w, rot_b, ent_w, ent_b, phase_shift):
    cosps = jnp.cos(phase_shift)[None, :]
    h = x
    for d in range(rot_w.shape[0]):
        h = jnp.tanh(h @ rot_w[d].T + rot_b[d])
        h = h * cosps
    logits = h @ ent_w.T + ent_b
    return jax.nn.softmax(logits, axis=-1)


if __name__ == "__main__":
    # Small, deterministic configuration: batch=8, input_dim=output_dim=32, depth=3.
    B, D, O, DEPTH = 8, 32, 32, 3

    key = jax.random.PRNGKey(0)
    k = jax.random.split(key, 6)
    x = jax.random.normal(k[0], (B, D), dtype=jnp.float32)
    rot_w = 0.2 * jax.random.normal(k[1], (DEPTH, D, D), dtype=jnp.float32)
    rot_b = 0.1 * jax.random.normal(k[2], (DEPTH, D), dtype=jnp.float32)
    ent_w = 0.2 * jax.random.normal(k[3], (O, D), dtype=jnp.float32)
    ent_b = 0.1 * jax.random.normal(k[4], (O,), dtype=jnp.float32)
    phase_shift = jax.random.normal(k[5], (O,), dtype=jnp.float32)

    ref = reference_forward(x, rot_w, rot_b, ent_w, ent_b, phase_shift)

    # f32 MXU operands: matches the PyTorch-equivalent reference to tight tolerance.
    params_f32 = prepare_params(rot_w, rot_b, ent_w, ent_b, phase_shift, use_bf16=False)
    out_f32 = jax.block_until_ready(quantum_inspired_forward(x, params_f32))
    assert out_f32.shape == (B, O)
    assert jnp.allclose(out_f32, ref, atol=1e-5, rtol=1e-5), "f32 mismatch vs reference"
    assert jnp.allclose(jnp.sum(out_f32, axis=-1), 1.0, atol=1e-5), "rows must sum to 1"

    # bf16 MXU operands (default fast path): validated at a bf16-appropriate tolerance.
    params_bf16 = prepare_params(rot_w, rot_b, ent_w, ent_b, phase_shift, use_bf16=True)
    out_bf16 = jax.block_until_ready(quantum_inspired_forward(x, params_bf16))
    assert out_bf16.shape == (B, O)
    assert jnp.allclose(out_bf16, ref, atol=5e-3, rtol=5e-2), "bf16 mismatch vs reference"
    assert jnp.allclose(jnp.sum(out_bf16, axis=-1), 1.0, atol=1e-5), "rows must sum to 1"

    print("KERNEL_OK")
</pallas_src>

<mosaic_0001>
module attributes {stable_mosaic.version = 11 : i64} {
  func.func @_fused_kernel(%arg0: i32, %arg1: memref<8x128xf32, #tpu.memory_space<vmem>>, %arg2: memref<3x128x128xf32, #tpu.memory_space<vmem>>, %arg3: memref<3x1x128xf32, #tpu.memory_space<vmem>>, %arg4: memref<128x128xf32, #tpu.memory_space<vmem>>, %arg5: memref<1x128xf32, #tpu.memory_space<vmem>>, %arg6: memref<8x128xf32, #tpu.memory_space<vmem>>) attributes {dimension_semantics = [#tpu.dimension_semantics<parallel>], iteration_bounds = array<i64: 1>, scalar_prefetch = 0 : i64, scratch_operands = 0 : i64, tpu.core_type = #tpu.core_type<tc>, window_params = [{transform_indices = @transform_0, window_bounds = array<i64: 8, 128>}, {pipeline_mode = #tpu.pipeline_mode<synchronous>, transform_indices = @transform_1, window_bounds = array<i64: 3, 128, 128>}, {pipeline_mode = #tpu.pipeline_mode<synchronous>, transform_indices = @transform_2, window_bounds = array<i64: 3, 1, 128>}, {pipeline_mode = #tpu.pipeline_mode<synchronous>, transform_indices = @transform_3, window_bounds = array<i64: 128, 128>}, {pipeline_mode = #tpu.pipeline_mode<synchronous>, transform_indices = @transform_4, window_bounds = array<i64: 1, 128>}, {transform_indices = @transform_5, window_bounds = array<i64: 8, 128>}]} {
    %c0 = arith.constant 0 : index
    %c0_0 = arith.constant 0 : index
    %0 = vector.load %arg1[%c0, %c0_0] : memref<8x128xf32, #tpu.memory_space<vmem>>, vector<8x128xf32>
    %c0_i32 = arith.constant 0 : i32
    %1 = arith.index_cast %c0_i32 : i32 to index
    %c0_1 = arith.constant 0 : index
    %c0_2 = arith.constant 0 : index
    %2 = vector.load %arg2[%1, %c0_1, %c0_2] : memref<3x128x128xf32, #tpu.memory_space<vmem>>, vector<1x128x128xf32>
    %3 = vector.shape_cast %2 : vector<1x128x128xf32> to vector<128x128xf32>
    %cst = arith.constant dense<0.000000e+00> : vector<8x128xf32>
    %4 = tpu.matmul %0, %3, %cst {dimension_numbers = #tpu.dot_dimension_numbers<[1], [0], [0], [1], [0, 0, 1, 1], [], []>} : vector<8x128xf32>, vector<128x128xf32>, vector<8x128xf32> -> vector<8x128xf32>
    %5 = arith.index_cast %c0_i32 : i32 to index
    %c0_3 = arith.constant 0 : index
    %c0_4 = arith.constant 0 : index
    %6 = vector.load %arg3[%5, %c0_3, %c0_4] : memref<3x1x128xf32, #tpu.memory_space<vmem>>, vector<1x1x128xf32>
    %7 = vector.shape_cast %6 : vector<1x1x128xf32> to vector<1x128xf32>
    %8 = vector.broadcast %7 : vector<1x128xf32> to vector<8x128xf32>
    %9 = arith.addf %4, %8 : vector<8x128xf32>
    %10 = math.tanh %9 : vector<8x128xf32>
    %c1_i32 = arith.constant 1 : i32
    %11 = arith.index_cast %c1_i32 : i32 to index
    %c0_5 = arith.constant 0 : index
    %c0_6 = arith.constant 0 : index
    %12 = vector.load %arg2[%11, %c0_5, %c0_6] : memref<3x128x128xf32, #tpu.memory_space<vmem>>, vector<1x128x128xf32>
    %13 = vector.shape_cast %12 : vector<1x128x128xf32> to vector<128x128xf32>
    %cst_7 = arith.constant dense<0.000000e+00> : vector<8x128xf32>
    %14 = tpu.matmul %10, %13, %cst_7 {dimension_numbers = #tpu.dot_dimension_numbers<[1], [0], [0], [1], [0, 0, 1, 1], [], []>} : vector<8x128xf32>, vector<128x128xf32>, vector<8x128xf32> -> vector<8x128xf32>
    %15 = arith.index_cast %c1_i32 : i32 to index
    %c0_8 = arith.constant 0 : index
    %c0_9 = arith.constant 0 : index
    %16 = vector.load %arg3[%15, %c0_8, %c0_9] : memref<3x1x128xf32, #tpu.memory_space<vmem>>, vector<1x1x128xf32>
    %17 = vector.shape_cast %16 : vector<1x1x128xf32> to vector<1x128xf32>
    %18 = vector.broadcast %17 : vector<1x128xf32> to vector<8x128xf32>
    %19 = arith.addf %14, %18 : vector<8x128xf32>
    %20 = math.tanh %19 : vector<8x128xf32>
    %c2_i32 = arith.constant 2 : i32
    %21 = arith.index_cast %c2_i32 : i32 to index
    %c0_10 = arith.constant 0 : index
    %c0_11 = arith.constant 0 : index
    %22 = vector.load %arg2[%21, %c0_10, %c0_11] : memref<3x128x128xf32, #tpu.memory_space<vmem>>, vector<1x128x128xf32>
    %23 = vector.shape_cast %22 : vector<1x128x128xf32> to vector<128x128xf32>
    %cst_12 = arith.constant dense<0.000000e+00> : vector<8x128xf32>
    %24 = tpu.matmul %20, %23, %cst_12 {dimension_numbers = #tpu.dot_dimension_numbers<[1], [0], [0], [1], [0, 0, 1, 1], [], []>} : vector<8x128xf32>, vector<128x128xf32>, vector<8x128xf32> -> vector<8x128xf32>
    %25 = arith.index_cast %c2_i32 : i32 to index
    %c0_13 = arith.constant 0 : index
    %c0_14 = arith.constant 0 : index
    %26 = vector.load %arg3[%25, %c0_13, %c0_14] : memref<3x1x128xf32, #tpu.memory_space<vmem>>, vector<1x1x128xf32>
    %27 = vector.shape_cast %26 : vector<1x1x128xf32> to vector<1x128xf32>
    %28 = vector.broadcast %27 : vector<1x128xf32> to vector<8x128xf32>
    %29 = arith.addf %24, %28 : vector<8x128xf32>
    %30 = math.tanh %29 : vector<8x128xf32>
    %c3_i32 = arith.constant 3 : i32
    %c0_15 = arith.constant 0 : index
    %c0_16 = arith.constant 0 : index
    %31 = vector.load %arg4[%c0_15, %c0_16] : memref<128x128xf32, #tpu.memory_space<vmem>>, vector<128x128xf32>
    %cst_17 = arith.constant dense<0.000000e+00> : vector<8x128xf32>
    %32 = tpu.matmul %30, %31, %cst_17 {dimension_numbers = #tpu.dot_dimension_numbers<[1], [0], [0], [1], [0, 0, 1, 1], [], []>} : vector<8x128xf32>, vector<128x128xf32>, vector<8x128xf32> -> vector<8x128xf32>
    %c0_18 = arith.constant 0 : index
    %c0_19 = arith.constant 0 : index
    %33 = vector.load %arg5[%c0_18, %c0_19] : memref<1x128xf32, #tpu.memory_space<vmem>>, vector<1x128xf32>
    %34 = vector.broadcast %33 : vector<1x128xf32> to vector<8x128xf32>
    %35 = arith.addf %32, %34 : vector<8x128xf32>
    %cst_20 = arith.constant dense<0xFF800000> : vector<8xf32>
    %36 = vector.multi_reduction <maximumf>, %35, %cst_20 [1] : vector<8x128xf32> to vector<8xf32>
    %37 = vector.shape_cast %36 : vector<8xf32> to vector<8x1xf32>
    %38 = vector.broadcast %37 : vector<8x1xf32> to vector<8x128xf32>
    %39 = arith.subf %35, %38 : vector<8x128xf32>
    %40 = math.exp %39 : vector<8x128xf32>
    %cst_21 = arith.constant dense<0.000000e+00> : vector<8xf32>
    %41 = vector.multi_reduction <add>, %40, %cst_21 [1] : vector<8x128xf32> to vector<8xf32>
    %42 = vector.shape_cast %41 : vector<8xf32> to vector<8x1xf32>
    %43 = tpu.reciprocal %42 : vector<8x1xf32> -> vector<8x1xf32>
    %44 = vector.broadcast %43 : vector<8x1xf32> to vector<8x128xf32>
    %45 = arith.mulf %40, %44 : vector<8x128xf32>
    %c0_22 = arith.constant 0 : index
    %c0_23 = arith.constant 0 : index
    %46 = vector.load %arg6[%c0_22, %c0_23] : memref<8x128xf32, #tpu.memory_space<vmem>>, vector<8x128xf32>
    tpu.vector_store %arg6[%c0_22, %c0_23], %45 {strides = array<i32>} : memref<8x128xf32, #tpu.memory_space<vmem>>, vector<8x128xf32>,
    return
  }
  func.func @transform_0(%arg0: i32) -> (i32, i32) {
    %c0_i32 = arith.constant 0 : i32
    %c0_i32_0 = arith.constant 0 : i32
    return %arg0, %c0_i32 : i32, i32
  }
  func.func @transform_1(%arg0: i32) -> (i32, i32, i32) {
    %c0_i32 = arith.constant 0 : i32
    %c0_i32_0 = arith.constant 0 : i32
    %c0_i32_1 = arith.constant 0 : i32
    %c0_i32_2 = arith.constant 0 : i32
    return %c0_i32, %c0_i32_0, %c0_i32_1 : i32, i32, i32
  }
  func.func @transform_2(%arg0: i32) -> (i32, i32, i32) {
    %c0_i32 = arith.constant 0 : i32
    %c0_i32_0 = arith.constant 0 : i32
    %c0_i32_1 = arith.constant 0 : i32
    %c0_i32_2 = arith.constant 0 : i32
    return %c0_i32, %c0_i32_0, %c0_i32_1 : i32, i32, i32
  }
  func.func @transform_3(%arg0: i32) -> (i32, i32) {
    %c0_i32 = arith.constant 0 : i32
    %c0_i32_0 = arith.constant 0 : i32
    %c0_i32_1 = arith.constant 0 : i32
    return %c0_i32, %c0_i32_0 : i32, i32
  }
  func.func @transform_4(%arg0: i32) -> (i32, i32) {
    %c0_i32 = arith.constant 0 : i32
    %c0_i32_0 = arith.constant 0 : i32
    %c0_i32_1 = arith.constant 0 : i32
    return %c0_i32, %c0_i32_0 : i32, i32
  }
  func.func @transform_5(%arg0: i32) -> (i32, i32) {
    %c0_i32 = arith.constant 0 : i32
    %c0_i32_0 = arith.constant 0 : i32
    return %arg0, %c0_i32 : i32, i32
  }
}

</mosaic_0001>

<bundles_post_ra>
// kernel: tpu_custom_call.1
= control target key start
LH: loop header
LB: loop body
LE: loop exit
PB: predicated region body
PF: predicated region fallthrough
CT: control target
= control target key end

     0   :  { %10 = vsyncpa [#allocation3], 0  ;;  %s1034_s0 = inlined_call_operand.hbm [shape: f32[8,128], index: 0, kind: input, shape index: {}]   ;;  %s1035_s1 = inlined_call_operand.hbm [shape: f32[3,128,128], index: 1, kind: input, shape index: {}]   ;;  %s1036_s2 = inlined_call_operand.vmem [shape: f32[3,1,128], index: 2, kind: input, shape index: {}]   ;;  %s1037_s3 = inlined_call_operand.hbm [shape: f32[128,128], index: 3, kind: input, shape index: {}]   ;;  %s1038_s4 = inlined_call_operand.vmem [shape: f32[1,128], index: 4, kind: input, shape index: {}]   ;;  %s1039_s5 = inlined_call_operand.hbm [shape: f32[8,128], index: 5, kind: output, shape index: {}]  }
   0x1   :  { %11 = vsyncpa [#allocation6], 0 }
   0x2   :  { %12 = vsyncpa [#allocation4], 0  ;;  %s889_s18 = smov [#allocation5]   ;;  %s795_s22 = scalar_lea.hbm %s1035_s1, 6144 }
   0x3   :  { %s28_s19 = sshll.u32 %s889_s18, 4  ;;  %p796_p0 = scmp.ne.s32.totalorder %s1035_s1, %s795_s22  ;;  %s29_s19 = int_to_ptr.vmem [resolvable:$true] %s28_s19 }
   0x4   :  { %p799_p1 = scmp.lt.u32.totalorder %s795_s22, %s1035_s1 }
   0x6   :  { %p801_p2 = pnand %p799_p1, %p796_p0 }
   0x8   :  { %804 = shalt.err (!%p801_p2)
}
   0x9   :  { %s805_s27 = scalar_lea.vmem %s29_s19, 6144  ;;  %p810_p4 = scmp.lt.s32.totalorder %s29_s19, %s29_s19 }
   0xa   :  { %p806_p3 = scmp.ne.s32.totalorder %s29_s19, %s805_s27  ;;  %p811_p5 = scmp.lt.s32.totalorder %s805_s27, %s805_s27 }
   0xc   :  { %p812_p6 = por %p811_p5, %p810_p4 }
   0xe   :  { %p813_p7 = pnand %p812_p6, %p806_p3 }
  0x10   :  { %816 = shalt.err (!%p813_p7)
}
  0x11   :  { %s890_s28 = smov 128   ;;  %s891_s29 = smov 8  }
  0x12   :  { %34 = dma.hbm_to_vmem [thread:$0]  %s1035_s1, 6144, %s29_s19, [#allocation6], %s890_s28, %s890_s28, %s891_s29  }
  0x13   :  { %s892_s7 = smov [#allocation2]   ;;  %s893_s9 = smov [#allocation7]  }
  0x14   :  { %s19_s8 = sshll.u32 %s892_s7, 4  ;;  %s42_s10 = sshll.u32 %s893_s9, 4  ;;  %s20_s8 = int_to_ptr.vmem [resolvable:$true] %s19_s8  ;;  %s43_s10 = int_to_ptr.vmem [resolvable:$true] %s42_s10 }
  0x15   :  { %s817_s13 = scalar_lea.hbm %s1034_s0, 128 }
  0x16   :  { %p818_p8 = scmp.ne.s32.totalorder %s1034_s0, %s817_s13  ;;  %p821_p9 = scmp.lt.u32.totalorder %s817_s13, %s1034_s0 }
  0x18   :  { %p823_p10 = pnand %p821_p9, %p818_p8 }
  0x1a   :  { %826 = shalt.err (!%p823_p10)
}
  0x1b   :  { %s827_s1 = scalar_lea.vmem %s20_s8, 128  ;;  %p832_p12 = scmp.lt.s32.totalorder %s20_s8, %s20_s8 }
  0x1c   :  { %p828_p11 = scmp.ne.s32.totalorder %s20_s8, %s827_s1  ;;  %p833_p13 = scmp.lt.s32.totalorder %s827_s1, %s827_s1 }
  0x1e   :  { %p834_p0 = por %p833_p13, %p832_p12 }
  0x20   :  { %p835_p1 = pnand %p834_p0, %p828_p11 }
  0x22   :  { %838 = shalt.err (!%p835_p1)
}
  0x23   :  { %22 = dma.hbm_to_vmem [thread:$0]  %s1034_s0, 128, %s20_s8, [#allocation3]  }
  0x24   :  { %s839_s22 = scalar_lea.hbm %s1037_s3, 2048 }
  0x25   :  { %p840_p2 = scmp.ne.s32.totalorder %s1037_s3, %s839_s22  ;;  %p843_p3 = scmp.lt.u32.totalorder %s839_s22, %s1037_s3 }
  0x27   :  { %p845_p4 = pnand %p843_p3, %p840_p2 }
  0x29   :  { %848 = shalt.err (!%p845_p4)
}
  0x2a   :  { %s849_s27 = scalar_lea.vmem %s43_s10, 2048  ;;  %p854_p6 = scmp.lt.s32.totalorder %s43_s10, %s43_s10 }
  0x2b   :  { %p850_p5 = scmp.ne.s32.totalorder %s43_s10, %s849_s27  ;;  %p855_p7 = scmp.lt.s32.totalorder %s849_s27, %s849_s27 }
  0x2d   :  { %p856_p8 = por %p855_p7, %p854_p6 }
  0x2f   :  { %p857_p9 = pnand %p856_p8, %p850_p5 }
  0x31   :  { %860 = shalt.err (!%p857_p9)
}
  0x32   :  { %48 = dma.hbm_to_vmem [thread:$0]  %s1037_s3, 2048, %s43_s10, [#allocation6], %s890_s28, %s890_s28, %s891_s29  }
  0x33   :  { %883 = dma.done.wait [#allocation3], 128  }
  0x34   :  { %884 = vsyncadd [#allocation3], 4294967168 }
  0x35   :  { %885 = dma.done.wait [#allocation6], 8192  }
  0x36   :  { %886 = vsyncadd [#allocation6], 4294959104  ;;  %v894_v0 = vmov 0.0|0.0   ;;  %vm895_vm0 = vmmov 0   ;;  %v896_v1 = vmov 0.0   ;;  %v61_v2 = vld [vmem:[#allocation5] sm:$0xff] }
  0x37   :  { %680 = vmatprep.subr.bf16.mxu0 %v894_v0  ;;  %572 = vmatprep.mubr.msk.f32.mxu0 %vm895_vm0, %v896_v1  ;;  %v62_v3 = vld [vmem:[#allocation5 + $0x8] sm:$0xff]  ;;  %v63_v4 = vld [vmem:[#allocation5 + $0x10] sm:$0xff]  ;;  %v64_v6 = vld [vmem:[#allocation5 + $0x18] sm:$0xff] }
  0x38   :  { %704 = vmatprep.subr.bf16.mxu1 %v894_v0  ;;  %607 = vmatprep.mubr.msk.f32.mxu1 %vm895_vm0, %v896_v1  ;;  %v681_v5 = vpack.c.bf16 %v62_v3, %v61_v2  ;;  %v684_v7 = vpack.c.bf16 %v64_v6, %v63_v4  ;;  %v65_v8 = vld [vmem:[#allocation5 + $0x20] sm:$0xff]  ;;  %v66_v9 = vld [vmem:[#allocation5 + $0x28] sm:$0xff]  ;;  %v158_v12 = vld [vmem:[#allocation5 + $0x90] sm:$0xff] }
  0x39   :  { %v156_v10 = vld [vmem:[#allocation5 + $0x80] sm:$0xff]  ;;  %v157_v11 = vld [vmem:[#allocation5 + $0x88] sm:$0xff]  ;;  %v159_v13 = vld [vmem:[#allocation5 + $0x98] sm:$0xff]  ;;  %v687_v14 = vpack.c.bf16 %v66_v9, %v65_v8 }
  0x3a   :  { %682 = vmatpush3.bf16.msra.mxu0 %v681_v5  ;;  %v705_v15 = vpack.c.bf16 %v157_v11, %v156_v10  ;;  %v67_v16 = vld [vmem:[#allocation5 + $0x30] sm:$0xff]  ;;  %v68_v17 = vld [vmem:[#allocation5 + $0x38] sm:$0xff]  ;;  %v708_v18 = vpack.c.bf16 %v159_v13, %v158_v12  ;;  %v160_v19 = vld [vmem:[#allocation5 + $0xa0] sm:$0xff] }
  0x3b   :  { %683 = vmatprep.subr.bf16.mxu0 %v894_v0  ;;  %v161_v20 = vld [vmem:[#allocation5 + $0xa8] sm:$0xff]  ;;  %v690_v21 = vpack.c.bf16 %v68_v17, %v67_v16  ;;  %v69_v22 = vld [vmem:[#allocation5 + $0x40] sm:$0xff]  ;;  %v162_v25 = vld [vmem:[#allocation5 + $0xb0] sm:$0xff] }
  0x3c   :  { %706 = vmatpush3.bf16.msra.mxu1 %v705_v15  ;;  %v70_v23 = vld [vmem:[#allocation5 + $0x48] sm:$0xff]  ;;  %v711_v24 = vpack.c.bf16 %v161_v20, %v160_v19  ;;  %v163_v26 = vld [vmem:[#allocation5 + $0xb8] sm:$0xff]  ;;  %v71_v28 = vld [vmem:[#allocation5 + $0x50] sm:$0xff] }
  0x3d   :  { %707 = vmatprep.subr.bf16.mxu1 %v894_v0  ;;  %v693_v27 = vpack.c.bf16 %v70_v23, %v69_v22  ;;  %v72_v29 = vld [vmem:[#allocation5 + $0x58] sm:$0xff]  ;;  %v714_v30 = vpack.c.bf16 %v163_v26, %v162_v25  ;;  %v164_v31 = vld [vmem:[#allocation5 + $0xc0] sm:$0xff]  ;;  %v165_v32 = vld [vmem:[#allocation5 + $0xc8] sm:$0xff] }
  0x3e   :  { %685 = vmatpush3.bf16.msra.mxu0 %v684_v7  ;;  %v696_v33 = vpack.c.bf16 %v72_v29, %v71_v28  ;;  %v73_v34 = vld [vmem:[#allocation5 + $0x60] sm:$0xff]  ;;  %v74_v35 = vld [vmem:[#allocation5 + $0x68] sm:$0xff]  ;;  %v717_v36 = vpack.c.bf16 %v165_v32, %v164_v31  ;;  %v75_v38 = vld [vmem:[#allocation5 + $0x70] sm:$0xff] }
  0x3f   :  { %686 = vmatprep.subr.bf16.mxu0 %v894_v0  ;;  %v699_v37 = vpack.c.bf16 %v74_v35, %v73_v34  ;;  %v76_v39 = vld [vmem:[#allocation5 + $0x78] sm:$0xff]  ;;  %v166_v42 = vld [vmem:[#allocation5 + $0xd0] sm:$0xff]  ;;  %v168_v45 = vld [vmem:[#allocation5 + $0xe0] sm:$0xff] }
  0x40   :  { %709 = vmatpush3.bf16.msra.mxu1 %v708_v18  ;;  %v702_v40 = vpack.c.bf16 %v76_v39, %v75_v38  ;;  %v60_v41 = vld [vmem:[#allocation2] sm:$0xff]  ;;  %v169_v46 = vld [vmem:[#allocation5 + $0xe8] sm:$0xff]  ;;  %v170_v48 = vld [vmem:[#allocation5 + $0xf0] sm:$0xff] }
  0x41   :  { %710 = vmatprep.subr.bf16.mxu1 %v894_v0  ;;  %v167_v43 = vld [vmem:[#allocation5 + $0xd8] sm:$0xff]  ;;  %v723_v47 = vpack.c.bf16 %v169_v46, %v168_v45  ;;  %v252_v51 = vld [vmem:[#allocation5 + $0x100] sm:$0xff]  ;;  %v253_v52 = vld [vmem:[#allocation5 + $0x108] sm:$0xff] }
  0x42   :  { %688 = vmatpush3.bf16.msra.mxu0 %v687_v14  ;;  %v720_v44 = vpack.c.bf16 %v167_v43, %v166_v42  ;;  %v171_v49 = vld [vmem:[#allocation5 + $0xf8] sm:$0xff]  ;;  %v254_v53 = vld [vmem:[#allocation5 + $0x110] sm:$0xff]  ;;  %v729_v54 = vpack.c.bf16 %v253_v52, %v252_v51  ;;  %v256_v57 = vld [vmem:[#allocation5 + $0x120] sm:$0xff] }
  0x43   :  { %689 = vmatprep.subr.bf16.mxu0 %v894_v0  ;;  %v726_v50 = vpack.c.bf16 %v171_v49, %v170_v48  ;;  %v255_v55 = vld [vmem:[#allocation5 + $0x118] sm:$0xff]  ;;  %v257_v58 = vld [vmem:[#allocation5 + $0x128] sm:$0xff]  ;;  %v258_v60 = vld [vmem:[#allocation5 + $0x130] sm:$0xff] }
  0x44   :  { %712 = vmatpush3.bf16.msra.mxu1 %v711_v24  ;;  %v732_v56 = vpack.c.bf16 %v255_v55, %v254_v53  ;;  %v735_v59 = vpack.c.bf16 %v257_v58, %v256_v57  ;;  %v259_v61 = vld [vmem:[#allocation5 + $0x138] sm:$0xff]  ;;  %v260_v63 = vld [vmem:[#allocation5 + $0x140] sm:$0xff]  ;;  %v261_v2 = vld [vmem:[#allocation5 + $0x148] sm:$0xff] }
  0x45   :  { %713 = vmatprep.subr.bf16.mxu1 %v894_v0  ;;  %v738_v62 = vpack.c.bf16 %v259_v61, %v258_v60  ;;  %v741_v3 = vpack.c.bf16 %v261_v2, %v260_v63  ;;  %v466_v4 = vld [vmem:[%s1036_s2] ss:$0 sm:$0xff]  ;;  %v262_v9 = vld [vmem:[#allocation5 + $0x150] sm:$0xff]  ;;  %v264_v12 = vld [vmem:[#allocation5 + $0x160] sm:$0xff] }
  0x46   :  { %691 = vmatpush3.bf16.msra.mxu0 %v690_v21  ;;  %v263_v10 = vld [vmem:[#allocation5 + $0x158] sm:$0xff]  ;;  %v265_v13 = vld [vmem:[#allocation5 + $0x168] sm:$0xff]  ;;  %v266_v15 = vld [vmem:[#allocation5 + $0x170] sm:$0xff] }
  0x47   :  { %692 = vmatprep.subr.bf16.mxu0 %v894_v0  ;;  %v744_v11 = vpack.c.bf16 %v263_v10, %v262_v9  ;;  %v747_v14 = vpack.c.bf16 %v265_v13, %v264_v12  ;;  %v267_v16 = vld [vmem:[#allocation5 + $0x178] sm:$0xff]  ;;  %v347_v18 = vld [vmem:[#allocation7] sm:$0xff]  ;;  %v348_v19 = vld [vmem:[#allocation7 + $0x8] sm:$0xff] }
  0x48   :  { %715 = vmatpush3.bf16.msra.mxu1 %v714_v30  ;;  %v750_v17 = vpack.c.bf16 %v267_v16, %v266_v15  ;;  %v349_v20 = vld [vmem:[#allocation7 + $0x10] sm:$0xff]  ;;  %v350_v21 = vld [vmem:[#allocation7 + $0x18] sm:$0xff]  ;;  %v351_v23 = vld [vmem:[#allocation7 + $0x20] sm:$0xff] }
  0x49   :  { %716 = vmatprep.subr.bf16.mxu1 %v894_v0  ;;  %v756_v22 = vpack.c.bf16 %v350_v21, %v349_v20  ;;  %v352_v24 = vld [vmem:[#allocation7 + $0x28] sm:$0xff]  ;;  %v353_v26 = vld [vmem:[#allocation7 + $0x30] sm:$0xff]  ;;  %v355_v29 = vld [vmem:[#allocation7 + $0x40] sm:$0xff] }
  0x4a   :  { %694 = vmatpush3.bf16.msra.mxu0 %v693_v27  ;;  %v759_v25 = vpack.c.bf16 %v352_v24, %v351_v23  ;;  %v354_v27 = vld [vmem:[#allocation7 + $0x38] sm:$0xff]  ;;  %v356_v30 = vld [vmem:[#allocation7 + $0x48] sm:$0xff]  ;;  %v361_v43 = vld [vmem:[#allocation7 + $0x70] sm:$0xff] }
  0x4b   :  { %695 = vmatprep.subr.bf16.mxu0 %v894_v0  ;;  %v762_v28 = vpack.c.bf16 %v354_v27, %v353_v26  ;;  %v765_v31 = vpack.c.bf16 %v356_v30, %v355_v29  ;;  %v468_v32 = vld [vmem:[%s1036_s2 + $0x1] ss:$0 sm:$0xff]  ;;  %v470_v46 = vld [vmem:[%s1036_s2 + $0x2] ss:$0 sm:$0xff]  ;;  %v471_v51 = vld [vmem:[%s1038_s4] ss:$0 sm:$0xff] }
  0x4c   :  { %718 = vmatpush3.bf16.msra.mxu1 %v717_v36  ;;  %v358_v38 = vld [vmem:[#allocation7 + $0x58] sm:$0xff]  ;;  %s897_s2 = smov [#allocation8]  }
  0x4d   :  { %719 = vmatprep.subr.bf16.mxu1 %v894_v0  ;;  %s456_s11 = sshll.u32 %s897_s2, 4  ;;  %s457_s11 = int_to_ptr.vmem [resolvable:$true] %s456_s11 }
  0x4e   :  { %697 = vmatpush3.bf16.msra.mxu0 %v696_v33  ;;  %s861_s12 = scalar_lea.vmem %s457_s11, 128  ;;  %p866_p11 = scmp.lt.s32.totalorder %s457_s11, %s457_s11 }
  0x4f   :  { %698 = vmatprep.subr.bf16.mxu0 %v894_v0  ;;  %p862_p10 = scmp.ne.s32.totalorder %s457_s11, %s861_s12  ;;  %p867_p12 = scmp.lt.s32.totalorder %s861_s12, %s861_s12 }
  0x50   :  { %721 = vmatpush3.bf16.msra.mxu1 %v720_v44  ;;  %v362_v44 = vld [vmem:[#allocation7 + $0x78] sm:$0xff] }
  0x51   :  { %722 = vmatprep.subr.bf16.mxu1 %v894_v0  ;;  %v774_v45 = vpack.c.bf16 %v362_v44, %v361_v43  ;;  %p868_p13 = por %p867_p12, %p866_p11 }
  0x52   :  { %700 = vmatpush3.bf16.msra.mxu0 %v699_v37  ;;  %v357_v37 = vld [vmem:[#allocation7 + $0x50] sm:$0xff] }
  0x53   :  { %701 = vmatprep.subr.bf16.mxu0 %v894_v0  ;;  %v768_v39 = vpack.c.bf16 %v358_v38, %v357_v37  ;;  %p869_p0 = pnand %p868_p13, %p862_p10 }
  0x54   :  { %724 = vmatpush3.bf16.msra.mxu1 %v723_v47 }
  0x55   :  { %725 = vmatprep.subr.bf16.mxu1 %v894_v0 }
  0x56   :  { %703 = vmatpush3.bf16.msra.mxu0 %v702_v40  ;;  %v359_v40 = vld [vmem:[#allocation7 + $0x60] sm:$0xff] }
  0x57   :  { %728 = vmatprep.subr.bf16.mxu0 %v894_v0 }
  0x58   :  { %727 = vmatpush3.bf16.msra.mxu1 %v726_v50 }
  0x59   :  { %573 = vmatmul.mubr.f32.vlgmr.msra.gmra.mrb[0].mxu0 %v60_v41  ;;  %752 = vmatprep.subr.bf16.mxu1 %v894_v0  ;;  %v360_v41 = vld [vmem:[#allocation7 + $0x68] sm:$0xff] }
  0x5a   :  { %642 = vmatprep.mubr.msk.f32.mxu0 %vm895_vm0, %v896_v1  ;;  %730 = vmatpush3.bf16.msra.mxu0 %v729_v54  ;;  %v771_v42 = vpack.c.bf16 %v360_v41, %v359_v40 }
  0x5b   :  { %731 = vmatprep.subr.bf16.mxu0 %v894_v0 }
  0x5e   :  { %733 = vmatpush3.bf16.msra.mxu0 %v732_v56 }
  0x5f   :  { %734 = vmatprep.subr.bf16.mxu0 %v894_v0 }
  0x62   :  { %736 = vmatpush3.bf16.msra.mxu0 %v735_v59 }
  0x63   :  { %737 = vmatprep.subr.bf16.mxu0 %v894_v0 }
  0x66   :  { %739 = vmatpush3.bf16.msra.mxu0 %v738_v62 }
  0x67   :  { %740 = vmatprep.subr.bf16.mxu0 %v894_v0 }
  0x6a   :  { %742 = vmatpush3.bf16.msra.mxu0 %v741_v3 }
  0x6b   :  { %743 = vmatprep.subr.bf16.mxu0 %v894_v0 }
  0x6e   :  { %745 = vmatpush3.bf16.msra.mxu0 %v744_v11 }
  0x6f   :  { %746 = vmatprep.subr.bf16.mxu0 %v894_v0 }
  0x72   :  { %748 = vmatpush3.bf16.msra.mxu0 %v747_v14 }
  0x73   :  { %749 = vmatprep.subr.bf16.mxu0 %v894_v0 }
  0x76   :  { %751 = vmatpush3.bf16.msra.mxu0 %v750_v17 }
 0x12c   :  { %v150_v5 = vpop.f32.mrb[0].mxu0 }
 0x12d   :  { %v151_v6 = vadd.f32 %v466_v4, %v150_v5  ;;  %v574_v7 = vpop.f32.mrb[1].mxu0 }
 0x12f   :  { %785 = vtanh.f32 %v151_v6 }
 0x139   :  { %v786_v8 = vpop.eup %785 }
 0x13a   :  { %608 = vmatmul.mubr.f32.vlgmr.msra.gmra.mrb[0].mxu1 %v786_v8 }
 0x13b   :  { %677 = vmatprep.mubr.msk.f32.mxu1 %vm895_vm0, %v896_v1  ;;  %v753_v1 = vpack.c.bf16 %v348_v19, %v347_v18 }
 0x13d   :  { %754 = vmatpush3.bf16.msra.mxu1 %v753_v1 }
 0x13e   :  { %755 = vmatprep.subr.bf16.mxu1 %v894_v0 }
 0x141   :  { %757 = vmatpush3.bf16.msra.mxu1 %v756_v22 }
 0x142   :  { %758 = vmatprep.subr.bf16.mxu1 %v894_v0 }
 0x145   :  { %760 = vmatpush3.bf16.msra.mxu1 %v759_v25 }
 0x146   :  { %761 = vmatprep.subr.bf16.mxu1 %v894_v0 }
 0x149   :  { %763 = vmatpush3.bf16.msra.mxu1 %v762_v28 }
 0x14a   :  { %764 = vmatprep.subr.bf16.mxu1 %v894_v0 }
 0x14d   :  { %766 = vmatpush3.bf16.msra.mxu1 %v765_v31 }
 0x14e   :  { %767 = vmatprep.subr.bf16.mxu1 %v894_v0 }
 0x151   :  { %769 = vmatpush3.bf16.msra.mxu1 %v768_v39 }
 0x152   :  { %770 = vmatprep.subr.bf16.mxu1 %v894_v0 }
 0x155   :  { %772 = vmatpush3.bf16.msra.mxu1 %v771_v42 }
 0x156   :  { %773 = vmatprep.subr.bf16.mxu1 %v894_v0 }
 0x159   :  { %775 = vmatpush3.bf16.msra.mxu1 %v774_v45 }
 0x20d   :  { %v246_v33 = vpop.f32.mrb[0].mxu1 }
 0x20e   :  { %v247_v34 = vadd.f32 %v468_v32, %v246_v33  ;;  %v609_v35 = vpop.f32.mrb[1].mxu1 }
 0x210   :  { %787 = vtanh.f32 %v247_v34 }
 0x21a   :  { %v788_v36 = vpop.eup %787 }
 0x21b   :  { %643 = vmatmul.mubr.f32.vlgmr.msra.gmra.mrb[2].mxu0 %v788_v36 }
 0x2ee   :  { %v342_v47 = vpop.f32.mrb[2].mxu0 }
 0x2ef   :  { %v343_v48 = vadd.f32 %v470_v46, %v342_v47  ;;  %v644_v49 = vpop.f32.mrb[3].mxu0 }
 0x2f1   :  { %789 = vtanh.f32 %v343_v48 }
 0x2fb   :  { %v790_v50 = vpop.eup %789 }
 0x2fc   :  { %678 = vmatmul.mubr.f32.vlgmr.msra.gmra.mrb[2].mxu1 %v790_v50 }
 0x3cf   :  { %v436_v52 = vpop.f32.mrb[2].mxu1 }
 0x3d0   :  { %v437_v53 = vadd.f32 %v471_v51, %v436_v52  ;;  %v679_v54 = vpop.f32.mrb[3].mxu1 }
 0x3d2   :  { %440 = vmax.xlane.f32.xlu0 %v437_v53 }
 0x45f   :  { %v441_v0 = vpop.xlane.xlu0 %440 }
 0x460   :  { %v442_v55 = vsub.f32 %v437_v53, %v441_v0 }
 0x462   :  { %v443_v56 = vmul.f32 1.442695, %v442_v55 }
 0x464   :  { %791 = vpow2.f32 %v443_v56 }
 0x46e   :  { %v792_v57 = vpop.eup %791 }
 0x46f   :  { %445 = vadd.xlane.f32.xlu0 %v792_v57 }
 0x4fc   :  { %v446_v58 = vpop.xlane.xlu0 %445 }
 0x4fd   :  { %793 = vrcp.f32 %v446_v58 }
 0x507   :  { %v794_v59 = vpop.eup %793 }
 0x508   :  { %v448_v60 = vmul.f32 %v794_v59, %v792_v57 }
 0x50a   :  { %449 = vst [vmem:[#allocation8] sm:$0xff] %v448_v60 }
 0x50b   :  { %872 = shalt.err (!%p869_p0)
}
 0x50c   :  { %s873_s14 = scalar_lea.hbm %s1039_s5, 128 }
 0x50d   :  { %p874_p1 = scmp.ne.s32.totalorder %s1039_s5, %s873_s14  ;;  %p877_p2 = scmp.lt.u32.totalorder %s873_s14, %s1039_s5 }
 0x50f   :  { %p879_p3 = pnand %p877_p2, %p874_p1 }
 0x511   :  { %882 = shalt.err (!%p879_p3)
}
 0x512   :  { %459 = dma.vmem_to_hbm [thread:$0]  %s457_s11, 128, %s1039_s5, [#allocation4]  }
 0x513   :  { %887 = dma.done.wait [#allocation4], 128  }
 0x514   :  { %888 = vsyncadd [#allocation4], 4294967168 }
 0x515   :  { %463 = vsyncpa [#allocation3], 1 }
 0x516   :  { %464 = vsyncpa [#allocation6], 1 }
 0x517   :  { %465 = vsyncpa [#allocation4], 1 }

</bundles_post_ra>
